<compile_context>
chip_gen: v7x
topology: tpu7x:2x2x1
jax: 0.10.0
libtpu: 0.0.40
codegen_flags: <defaults>
</compile_context>

<pallas_src>
import functools

import jax
import jax.numpy as jnp
from jax.experimental import pallas as pl
from jax.experimental.pallas import tpu as pltpu

LN_EPS = 1e-5  # PyTorch nn.LayerNorm default


def _round_up(x, m):
    return ((x + m - 1) // m) * m


def _ber_self_output_kernel(h_ref, x_ref, wt_ref, p_ref, o_ref, acc_ref, *, precision):
    """Computes one (tile_m, H) output slab; grid axis 1 reduces over input features."""
    k = pl.program_id(1)
    nk = pl.num_programs(1)

    # MXU matmul of the current K-slice, f32 accumulation.
    part = jnp.dot(h_ref[...], wt_ref[...],
                   preferred_element_type=jnp.float32, precision=precision)

    @pl.when(k == 0)
    def _():
        acc_ref[...] = part

    @pl.when(k != 0)
    def _():
        acc_ref[...] += part

    @pl.when(k == nk - 1)
    def _():
        # p_ref is (3, H) f32: row 0 = linear bias, row 1 = LN gamma, row 2 = LN beta.
        y = acc_ref[...] + p_ref[0:1, :] + x_ref[...].astype(jnp.float32)
        # TODO(synk): dropout is identity in eval mode; training-mode dropout
        # (pltpu.prng_seed / prng_random_bits masking) is omitted.
        mean = jnp.mean(y, axis=-1, keepdims=True)
        centered = y - mean
        var = jnp.mean(centered * centered, axis=-1, keepdims=True)
        norm = centered * jax.lax.rsqrt(var + LN_EPS)
        o_ref[...] = (norm * p_ref[1:2, :] + p_ref[2:3, :]).astype(o_ref.dtype)


def _vmem_estimate(tile_m, tile_k, H, num_k, act_elt, w_elt):
    n_w_buf = 1 if num_k == 1 else 2          # single-buffer only when grid-invariant
    return (2 * tile_m * tile_k * act_elt     # hidden_state slab (double-buffered)
            + 2 * tile_m * H * act_elt        # residual slab (double-buffered)
            + 2 * tile_m * H * act_elt        # output slab (double-buffered)
            + n_w_buf * tile_k * H * w_elt    # W^T slab
            + 3 * H * 4                       # packed bias/gamma/beta (single-buffered)
            + tile_m * H * 4                  # f32 accumulator scratch
            + 3 * tile_m * H * 4)             # f32 intermediates headroom


def ber_self_output(hidden_state, x, weight, bias, gamma, beta, *,
                    tile_m=512, precision=None):
    """hidden_state, x: [B, S, H]; weight: [H, H] (PyTorch (out, in)); bias/gamma/beta: [H]."""
    B, S, H = hidden_state.shape
    rows = B * S
    act_elt = jnp.dtype(hidden_state.dtype).itemsize
    w_elt = jnp.dtype(weight.dtype).itemsize

    if precision is None and hidden_state.dtype == jnp.float32 and weight.dtype == jnp.float32:
        # Match PyTorch f32 Linear numerics.  For throughput, pass
        # precision=jax.lax.Precision.DEFAULT or carry bf16 activations/weights in HBM.
        precision = jax.lax.Precision.HIGHEST

    # Per-device VMEM budget (v7x TensorCores only have 64 MiB); leave compiler headroom.
    try:
        vmem_cap_hw = int(pltpu.get_tpu_info().vmem_capacity_bytes)
    except Exception:
        vmem_cap_hw = 64 * 1024 * 1024
    vmem_budget = int(0.85 * vmem_cap_hw)

    # K (input-feature) tiling: only when the full W^T slab would hog VMEM.
    if H * H * w_elt > 16 * 1024 * 1024:
        tile_k = next((t for t in (512, 256, 128) if H % t == 0), H)
    else:
        tile_k = H
    num_k = H // tile_k

    # Row tile: multiple of 8, clamped to the row count, halved until it fits the budget.
    tile_m = max(8, min(_round_up(tile_m, 8), _round_up(rows, 8)))
    while tile_m > 128 and _vmem_estimate(tile_m, tile_k, H, num_k, act_elt, w_elt) > vmem_budget:
        tile_m = max(128, _round_up(tile_m // 2, 8))

    est = _vmem_estimate(tile_m, tile_k, H, num_k, act_elt, w_elt)
    vmem_limit = None
    if est > 32 * 1024 * 1024:            # only raise past the scoped default when needed
        vmem_limit = int(min(_round_up(est, 1024), vmem_budget))

    h2 = hidden_state.reshape(rows, H)
    x2 = x.reshape(rows, H)
    wt = weight.T                                                  # one-time transpose: (in, out)
    params = jnp.stack([bias, gamma, beta]).astype(jnp.float32)    # (3, H)

    # Partial last row block (rows % tile_m != 0) is masked by Pallas; no wrapper padding.
    grid = (pl.cdiv(rows, tile_m), num_k)

    # Single-buffer W^T only when it is grid-invariant (num_k == 1); K-tiled weight
    # slices keep default double-buffering so their DMA overlaps the MXU.
    wt_kwargs = {"pipeline_mode": pl.Buffered(1)} if num_k == 1 else {}
    # NOTE: on v6e, pl.Buffered(3) on the two streamed row-slab inputs is a
    # worthwhile sweep knob when the VMEM estimate leaves room.

    out = pl.pallas_call(
        functools.partial(_ber_self_output_kernel, precision=precision),
        out_shape=jax.ShapeDtypeStruct((rows, H), hidden_state.dtype),
        grid=grid,
        in_specs=[
            pl.BlockSpec((tile_m, tile_k), lambda i, k: (i, k)),        # hidden rows, K slice
            pl.BlockSpec((tile_m, H), lambda i, k: (i, 0)),             # residual rows (resident over k)
            pl.BlockSpec((tile_k, H), lambda i, k: (k, 0), **wt_kwargs),  # W^T slab
            pl.BlockSpec((3, H), lambda i, k: (0, 0),
                         pipeline_mode=pl.Buffered(1)),                 # bias / gamma / beta
        ],
        out_specs=pl.BlockSpec((tile_m, H), lambda i, k: (i, 0)),
        scratch_shapes=[pltpu.VMEM((tile_m, H), jnp.float32)],          # f32 matmul accumulator
        compiler_params=pltpu.CompilerParams(
            dimension_semantics=("parallel", "arbitrary"),
            vmem_limit_bytes=vmem_limit,
        ),
    )(h2, x2, wt, params)

    return out.reshape(B, S, H)


def reference(hidden_state, x, weight, bias, gamma, beta):
    y = jnp.einsum("bsh,oh->bso", hidden_state, weight, precision="highest") + bias
    y = x + y
    mean = jnp.mean(y, axis=-1, keepdims=True)
    var = jnp.mean((y - mean) ** 2, axis=-1, keepdims=True)
    return (y - mean) * jax.lax.rsqrt(var + LN_EPS) * gamma + beta


if __name__ == "__main__":
    B, S, H = 2, 8, 32
    key = jax.random.PRNGKey(0)
    k1, k2, k3, k4 = jax.random.split(key, 4)

    hidden_state = jax.random.normal(k1, (B, S, H), dtype=jnp.float32)
    x = jax.random.normal(k2, (B, S, H), dtype=jnp.float32)

    # Deterministic parameter init (shapes match nn.Linear(H, H) / nn.LayerNorm(H)).
    bound = 1.0 / (H ** 0.5)
    weight = jax.random.uniform(k3, (H, H), minval=-bound, maxval=bound, dtype=jnp.float32)
    bias = jax.random.uniform(k4, (H,), minval=-bound, maxval=bound, dtype=jnp.float32)
    gamma = jnp.ones((H,), dtype=jnp.float32)
    beta = jnp.zeros((H,), dtype=jnp.float32)

    out = ber_self_output(hidden_state, x, weight, bias, gamma, beta)
    out = jax.block_until_ready(out)

    ref = reference(hidden_state, x, weight, bias, gamma, beta)
    assert out.shape == (B, S, H)
    assert jnp.allclose(out, ref, atol=1e-5, rtol=1e-5), "mismatch vs reference"

    print("KERNEL_OK")
</pallas_src>

<mosaic_0001>
module attributes {stable_mosaic.version = 11 : i64} {
  func.func @_ber_self_output_kernel(%arg0: i32, %arg1: i32, %arg2: memref<16x32xf32, #tpu.memory_space<vmem>>, %arg3: memref<16x32xf32, #tpu.memory_space<vmem>>, %arg4: memref<32x32xf32, #tpu.memory_space<vmem>>, %arg5: memref<3x32xf32, #tpu.memory_space<vmem>>, %arg6: memref<16x32xf32, #tpu.memory_space<vmem>>, %arg7: memref<16x32xf32, #tpu.memory_space<vmem>>) attributes {dimension_semantics = [#tpu.dimension_semantics<parallel>, #tpu.dimension_semantics<arbitrary>], iteration_bounds = array<i64: 1, 1>, scalar_prefetch = 0 : i64, scratch_operands = 1 : i64, tpu.core_type = #tpu.core_type<tc>, window_params = [{transform_indices = @transform_0, window_bounds = array<i64: 16, 32>}, {transform_indices = @transform_1, window_bounds = array<i64: 16, 32>}, {pipeline_mode = #tpu.pipeline_mode<synchronous>, transform_indices = @transform_2, window_bounds = array<i64: 32, 32>}, {pipeline_mode = #tpu.pipeline_mode<synchronous>, transform_indices = @transform_3, window_bounds = array<i64: 3, 32>}, {transform_indices = @transform_4, window_bounds = array<i64: 16, 32>}]} {
    %c0 = arith.constant 0 : index
    %c0_0 = arith.constant 0 : index
    %0 = vector.load %arg2[%c0, %c0_0] : memref<16x32xf32, #tpu.memory_space<vmem>>, vector<16x32xf32>
    %c0_1 = arith.constant 0 : index
    %c0_2 = arith.constant 0 : index
    %1 = vector.load %arg4[%c0_1, %c0_2] : memref<32x32xf32, #tpu.memory_space<vmem>>, vector<32x32xf32>
    %cst = arith.constant dense<0.000000e+00> : vector<16x32xf32>
    %2 = tpu.matmul %0, %1, %cst {dimension_numbers = #tpu.dot_dimension_numbers<[1], [0], [0], [1], [0, 0, 1, 1], [], []>, precision = #tpu.contract_precision<fp32>} : vector<16x32xf32>, vector<32x32xf32>, vector<16x32xf32> -> vector<16x32xf32>
    %c0_i32 = arith.constant 0 : i32
    %3 = arith.cmpi eq, %arg1, %c0_i32 : i32
    %4 = arith.extui %3 : i1 to i32
    %c0_i32_3 = arith.constant 0 : i32
    %5 = arith.cmpi ne, %4, %c0_i32_3 : i32
    scf.if %5 {
      %c0_8 = arith.constant 0 : index
      %c0_9 = arith.constant 0 : index
      %12 = vector.load %arg7[%c0_8, %c0_9] : memref<16x32xf32, #tpu.memory_space<vmem>>, vector<16x32xf32>
      tpu.vector_store %arg7[%c0_8, %c0_9], %2 {strides = array<i32>} : memref<16x32xf32, #tpu.memory_space<vmem>>, vector<16x32xf32>,
    } else {
    }
    %c0_i32_4 = arith.constant 0 : i32
    %6 = arith.cmpi ne, %arg1, %c0_i32_4 : i32
    %7 = arith.extui %6 : i1 to i32
    %c0_i32_5 = arith.constant 0 : i32
    %8 = arith.cmpi ne, %7, %c0_i32_5 : i32
    scf.if %8 {
      %c0_8 = arith.constant 0 : index
      %c0_9 = arith.constant 0 : index
      %12 = vector.load %arg7[%c0_8, %c0_9] : memref<16x32xf32, #tpu.memory_space<vmem>>, vector<16x32xf32>
      %13 = arith.addf %12, %2 : vector<16x32xf32>
      %c0_10 = arith.constant 0 : index
      %c0_11 = arith.constant 0 : index
      %14 = vector.load %arg7[%c0_10, %c0_11] : memref<16x32xf32, #tpu.memory_space<vmem>>, vector<16x32xf32>
      tpu.vector_store %arg7[%c0_10, %c0_11], %13 {strides = array<i32>} : memref<16x32xf32, #tpu.memory_space<vmem>>, vector<16x32xf32>,
    } else {
    }
    %c0_i32_6 = arith.constant 0 : i32
    %9 = arith.cmpi eq, %arg1, %c0_i32_6 : i32
    %10 = arith.extui %9 : i1 to i32
    %c0_i32_7 = arith.constant 0 : i32
    %11 = arith.cmpi ne, %10, %c0_i32_7 : i32
    scf.if %11 {
      %c0_8 = arith.constant 0 : index
      %c0_9 = arith.constant 0 : index
      %12 = vector.load %arg7[%c0_8, %c0_9] : memref<16x32xf32, #tpu.memory_space<vmem>>, vector<16x32xf32>
      %c0_10 = arith.constant 0 : index
      %c0_11 = arith.constant 0 : index
      %13 = vector.load %arg5[%c0_10, %c0_11] : memref<3x32xf32, #tpu.memory_space<vmem>>, vector<1x32xf32>
      %14 = vector.broadcast %13 : vector<1x32xf32> to vector<16x32xf32>
      %15 = arith.addf %12, %14 : vector<16x32xf32>
      %c0_12 = arith.constant 0 : index
      %c0_13 = arith.constant 0 : index
      %16 = vector.load %arg3[%c0_12, %c0_13] : memref<16x32xf32, #tpu.memory_space<vmem>>, vector<16x32xf32>
      %17 = arith.addf %15, %16 : vector<16x32xf32>
      %cst_14 = arith.constant dense<0.000000e+00> : vector<16xf32>
      %18 = vector.multi_reduction <add>, %17, %cst_14 [1] : vector<16x32xf32> to vector<16xf32>
      %19 = vector.shape_cast %18 : vector<16xf32> to vector<16x1xf32>
      %cst_15 = arith.constant 3.200000e+01 : f32
      %20 = vector.broadcast %cst_15 : f32 to vector<16x1xf32>
      %21 = arith.divf %19, %20 : vector<16x1xf32>
      %22 = vector.broadcast %21 : vector<16x1xf32> to vector<16x32xf32>
      %23 = arith.subf %17, %22 : vector<16x32xf32>
      %24 = arith.mulf %23, %23 : vector<16x32xf32>
      %cst_16 = arith.constant dense<0.000000e+00> : vector<16xf32>
      %25 = vector.multi_reduction <add>, %24, %cst_16 [1] : vector<16x32xf32> to vector<16xf32>
      %26 = vector.shape_cast %25 : vector<16xf32> to vector<16x1xf32>
      %cst_17 = arith.constant 3.200000e+01 : f32
      %27 = vector.broadcast %cst_17 : f32 to vector<16x1xf32>
      %28 = arith.divf %26, %27 : vector<16x1xf32>
      %cst_18 = arith.constant 9.99999974E-6 : f32
      %29 = vector.broadcast %cst_18 : f32 to vector<16x1xf32>
      %30 = arith.addf %28, %29 : vector<16x1xf32>
      %31 = math.rsqrt %30 : vector<16x1xf32>
      %32 = vector.broadcast %31 : vector<16x1xf32> to vector<16x32xf32>
      %33 = arith.mulf %23, %32 : vector<16x32xf32>
      %c1 = arith.constant 1 : index
      %c0_19 = arith.constant 0 : index
      %34 = vector.load %arg5[%c1, %c0_19] : memref<3x32xf32, #tpu.memory_space<vmem>>, vector<1x32xf32>
      %35 = vector.broadcast %34 : vector<1x32xf32> to vector<16x32xf32>
      %36 = arith.mulf %33, %35 : vector<16x32xf32>
      %c2 = arith.constant 2 : index
      %c0_20 = arith.constant 0 : index
      %37 = vector.load %arg5[%c2, %c0_20] : memref<3x32xf32, #tpu.memory_space<vmem>>, vector<1x32xf32>
      %38 = vector.broadcast %37 : vector<1x32xf32> to vector<16x32xf32>
      %39 = arith.addf %36, %38 : vector<16x32xf32>
      %c0_21 = arith.constant 0 : index
      %c0_22 = arith.constant 0 : index
      %40 = vector.load %arg6[%c0_21, %c0_22] : memref<16x32xf32, #tpu.memory_space<vmem>>, vector<16x32xf32>
      tpu.vector_store %arg6[%c0_21, %c0_22], %39 {strides = array<i32>} : memref<16x32xf32, #tpu.memory_space<vmem>>, vector<16x32xf32>,
    } else {
    }
    return
  }
  func.func @transform_0(%arg0: i32, %arg1: i32) -> (i32, i32) {
    %c0_i32 = arith.constant 0 : i32
    return %arg0, %arg1 : i32, i32
  }
  func.func @transform_1(%arg0: i32, %arg1: i32) -> (i32, i32) {
    %c0_i32 = arith.constant 0 : i32
    %c0_i32_0 = arith.constant 0 : i32
    return %arg0, %c0_i32 : i32, i32
  }
  func.func @transform_2(%arg0: i32, %arg1: i32) -> (i32, i32) {
    %c0_i32 = arith.constant 0 : i32
    %c0_i32_0 = arith.constant 0 : i32
    return %arg1, %c0_i32 : i32, i32
  }
  func.func @transform_3(%arg0: i32, %arg1: i32) -> (i32, i32) {
    %c0_i32 = arith.constant 0 : i32
    %c0_i32_0 = arith.constant 0 : i32
    %c0_i32_1 = arith.constant 0 : i32
    return %c0_i32, %c0_i32_0 : i32, i32
  }
  func.func @transform_4(%arg0: i32, %arg1: i32) -> (i32, i32) {
    %c0_i32 = arith.constant 0 : i32
    %c0_i32_0 = arith.constant 0 : i32
    return %arg0, %c0_i32 : i32, i32
  }
}

</mosaic_0001>

<bundles_post_ra>
// kernel: tpu_custom_call.1
= control target key start
LH: loop header
LB: loop body
LE: loop exit
PB: predicated region body
PF: predicated region fallthrough
CT: control target
= control target key end

     0   :  { %9 = vsyncpa [#allocation4], 0  ;;  %s1089_s0 = inlined_call_operand.hbm [shape: f32[16,32], index: 0, kind: input, shape index: {}]   ;;  %s1090_s1 = inlined_call_operand.hbm [shape: f32[16,32], index: 1, kind: input, shape index: {}]   ;;  %s1091_s2 = inlined_call_operand.hbm [shape: f32[32,32], index: 2, kind: input, shape index: {}]   ;;  %s1092_s3 = inlined_call_operand.vmem [shape: f32[3,32], index: 3, kind: input, shape index: {}]   ;;  %s1093_s4 = inlined_call_operand.hbm [shape: f32[16,32], index: 4, kind: output, shape index: {}]  }
   0x1   :  { %10 = vsyncpa [#allocation7], 0 }
   0x2   :  { %11 = vsyncpa [#allocation5], 0  ;;  %s960_s15 = smov [#allocation6]   ;;  %s961_s17 = smov [#allocation3]  }
   0x3   :  { %s29_s16 = sshll.u32 %s960_s15, 4  ;;  %s17_s18 = sshll.u32 %s961_s17, 4  ;;  %s30_s16 = int_to_ptr.vmem [resolvable:$true] %s29_s16  ;;  %s991_s18 = int_to_ptr.vmem [resolvable:$true] %s17_s18 }
   0x4   :  { %s866_s21 = scalar_lea.hbm %s1090_s1, 256 }
   0x5   :  { %p867_p0 = scmp.ne.s32.totalorder %s1090_s1, %s866_s21  ;;  %p870_p1 = scmp.lt.u32.totalorder %s866_s21, %s1090_s1 }
   0x7   :  { %p872_p2 = pnand %p870_p1, %p867_p0 }
   0x9   :  { %875 = shalt.err (!%p872_p2)
}
   0xa   :  { %s876_s26 = scalar_lea.vmem %s30_s16, 256  ;;  %p881_p4 = scmp.lt.s32.totalorder %s30_s16, %s30_s16 }
   0xb   :  { %p877_p3 = scmp.ne.s32.totalorder %s30_s16, %s876_s26  ;;  %p882_p5 = scmp.lt.s32.totalorder %s876_s26, %s876_s26 }
   0xd   :  { %p883_p6 = por %p882_p5, %p881_p4 }
   0xf   :  { %p884_p7 = pnand %p883_p6, %p877_p3 }
  0x11   :  { %887 = shalt.err (!%p884_p7)
}
  0x12   :  { %s962_s27 = smov 128   ;;  %s963_s28 = smov 8  }
  0x13   :  { %35 = dma.hbm_to_vmem [thread:$0]  %s1090_s1, 256, %s30_s16, [#allocation7], %s962_s27, %s962_s27, %s963_s28  }
  0x14   :  { %s888_s7 = scalar_lea.hbm %s1089_s0, 256 }
  0x15   :  { %p889_p8 = scmp.ne.s32.totalorder %s1089_s0, %s888_s7  ;;  %p892_p9 = scmp.lt.u32.totalorder %s888_s7, %s1089_s0 }
  0x17   :  { %p894_p10 = pnand %p892_p9, %p889_p8 }
  0x19   :  { %897 = shalt.err (!%p894_p10)
}
  0x1a   :  { %s898_s12 = scalar_lea.vmem %s991_s18, 256  ;;  %p903_p12 = scmp.lt.s32.totalorder %s991_s18, %s991_s18 }
  0x1b   :  { %p899_p11 = scmp.ne.s32.totalorder %s991_s18, %s898_s12  ;;  %p904_p13 = scmp.lt.s32.totalorder %s898_s12, %s898_s12 }
  0x1d   :  { %p905_p0 = por %p904_p13, %p903_p12 }
  0x1f   :  { %p906_p1 = pnand %p905_p0, %p899_p11 }
  0x21   :  { %909 = shalt.err (!%p906_p1)
}
  0x22   :  { %23 = dma.hbm_to_vmem [thread:$0]  %s1089_s0, 256, %s991_s18, [#allocation4], %s962_s27, %s962_s27, %s963_s28  }
  0x23   :  { %s964_s14 = smov [#allocation8]   ;;  %s910_s19 = scalar_lea.hbm %s1091_s2, 512 }
  0x24   :  { %s41_s15 = sshll.u32 %s964_s14, 4  ;;  %p911_p2 = scmp.ne.s32.totalorder %s1091_s2, %s910_s19  ;;  %s42_s15 = int_to_ptr.vmem [resolvable:$true] %s41_s15 }
  0x25   :  { %p914_p3 = scmp.lt.u32.totalorder %s910_s19, %s1091_s2 }
  0x27   :  { %p916_p4 = pnand %p914_p3, %p911_p2 }
  0x29   :  { %919 = shalt.err (!%p916_p4)
}
  0x2a   :  { %s920_s24 = scalar_lea.vmem %s42_s15, 512  ;;  %p925_p6 = scmp.lt.s32.totalorder %s42_s15, %s42_s15 }
  0x2b   :  { %p921_p5 = scmp.ne.s32.totalorder %s42_s15, %s920_s24  ;;  %p926_p7 = scmp.lt.s32.totalorder %s920_s24, %s920_s24 }
  0x2d   :  { %p927_p8 = por %p926_p7, %p925_p6 }
  0x2f   :  { %p928_p9 = pnand %p927_p8, %p921_p5 }
  0x31   :  { %931 = shalt.err (!%p928_p9)
}
  0x32   :  { %47 = dma.hbm_to_vmem [thread:$0]  %s1091_s2, 512, %s42_s15, [#allocation7], %s962_s27, %s962_s27, %s963_s28  }
  0x33   :  { %954 = dma.done.wait [#allocation4], 256  }
  0x34   :  { %955 = vsyncadd [#allocation4], 4294967040 }
  0x35   :  { %956 = dma.done.wait [#allocation7], 768  }
  0x36   :  { %957 = vsyncadd [#allocation7], 4294966528  ;;  %vm65_vm0 = vcmask 261120   ;;  %v61_v0 = vld [vmem:[#allocation8] sm:$0xff]  ;;  %v62_v1 = vld [vmem:[#allocation8 + $0x8] sm:$0xff]  ;;  %s965_s6 = smov [#allocation9]  }
  0x37   :  { %v63_v2 = vld [vmem:[#allocation8 + $0x10] sm:$0xff]  ;;  %v73_v3 = vand.u32 4294901760, %v61_v0  ;;  %v76_v4 = vand.u32 4294901760, %v62_v1  ;;  %v64_v5 = vld [vmem:[#allocation8 + $0x18] sm:$0xff]  ;;  %v59_v7 = vld [vmem:[#allocation3] sm:$0xff]  ;;  %s680_s7 = sshll.u32 %s965_s6, 4  ;;  %s681_s7 = int_to_ptr.vmem [resolvable:$true] %s680_s7 }
  0x38   :  { %v79_v6 = vand.u32 4294901760, %v63_v2  ;;  %v60_v8 = vld [vmem:[#allocation3 + $0x8] sm:$0xff]  ;;  %v82_v9 = vand.u32 4294901760, %v64_v5  ;;  %v67_v10 = vsel %vm65_vm0, %v59_v7, 0  ;;  %v693_v52 = vld [vmem:[%s1092_s3] ss:$0 sm:$0xff]  ;;  %p937_p11 = scmp.lt.s32.totalorder %s681_s7, %s681_s7 }
  0x39   :  { %v70_v11 = vsel %vm65_vm0, %v60_v8, 0  ;;  %v798_v12 = vpack.c.bf16 %v76_v4, %v73_v3  ;;  %v1045_v13 = vand.u32 4294901760, %v67_v10  ;;  %v163_v15 = vsub.f32 %v61_v0, %v73_v3  ;;  %v628_v55 = vld [vmem:[#allocation6] sm:$0xff]  ;;  %v629_v58 = vld [vmem:[#allocation6 + $0x8] sm:$0xff]  ;;  %s932_s8 = scalar_lea.vmem %s681_s7, 256 }
  0x3a   :  { %v1047_v14 = vand.u32 4294901760, %v70_v11  ;;  %v802_v16 = vpack.c.bf16 %v82_v9, %v79_v6  ;;  %v170_v17 = vsub.f32 %v62_v1, %v76_v4  ;;  %v177_v18 = vsub.f32 %v63_v2, %v79_v6  ;;  %p933_p10 = scmp.ne.s32.totalorder %s681_s7, %s932_s8  ;;  %p938_p12 = scmp.lt.s32.totalorder %s932_s8, %s932_s8 }
  0x3b   :  { %v184_v19 = vsub.f32 %v64_v5, %v82_v9  ;;  %799 = vmatprep.subr.bf16.mxu1 %v798_v12  ;;  %823 = vmatprep.subr.bf16.mxu0 %v798_v12  ;;  %v142_v20 = vsub.f32 %v67_v10, %v1045_v13  ;;  %v164_v22 = vand.u32 4294901760, %v163_v15 }
  0x3c   :  { %v152_v21 = vsub.f32 %v70_v11, %v1047_v14  ;;  %801 = vmatpush3.bf16.msra.mxu1 %v798_v12  ;;  %825 = vmatpush3.bf16.msra.mxu0 %v798_v12  ;;  %v171_v23 = vand.u32 4294901760, %v170_v17  ;;  %v178_v24 = vand.u32 4294901760, %v177_v18  ;;  %v814_v44 = vpack.c.bf16 %v170_v17, %v163_v15  ;;  %p939_p13 = por %p938_p12, %p937_p11 }
  0x3d   :  { %v185_v25 = vand.u32 4294901760, %v184_v19  ;;  %803 = vmatprep.subr.bf16.mxu1 %v802_v16  ;;  %827 = vmatprep.subr.bf16.mxu0 %v802_v16  ;;  %v143_v26 = vand.u32 4294901760, %v142_v20  ;;  %v165_v28 = vsub.f32 %v163_v15, %v164_v22  ;;  %v818_v45 = vpack.c.bf16 %v184_v19, %v177_v18 }
  0x3e   :  { %v153_v27 = vand.u32 4294901760, %v152_v21  ;;  %v172_v29 = vsub.f32 %v170_v17, %v171_v23  ;;  %v830_v30 = vpack.c.bf16 %v171_v23, %v164_v22  ;;  %v179_v31 = vsub.f32 %v177_v18, %v178_v24  ;;  %v695_v18 = vld [vmem:[%s1092_s3 + $0x2] ss:$0 sm:$0xff]  ;;  %p940_p0 = pnand %p939_p13, %p933_p10 }
  0x3f   :  { %v186_v32 = vsub.f32 %v184_v19, %v185_v25  ;;  %v144_v33 = vsub.f32 %v142_v20, %v143_v26  ;;  %773 = vmatprep.mubr.f32.mxu0 %v143_v26  ;;  %v166_v35 = vand.u32 4294901760, %v165_v28  ;;  %v834_v43 = vpack.c.bf16 %v185_v25, %v178_v24 }
  0x40   :  { %v154_v34 = vsub.f32 %v152_v21, %v153_v27  ;;  %805 = vmatpush3.bf16.msra.mxu1 %v802_v16  ;;  %829 = vmatpush3.bf16.msra.mxu0 %v802_v16  ;;  %v173_v36 = vand.u32 4294901760, %v172_v29  ;;  %v180_v37 = vand.u32 4294901760, %v179_v31 }
  0x41   :  { %v187_v38 = vand.u32 4294901760, %v186_v32  ;;  %v145_v39 = vand.u32 4294901760, %v144_v33  ;;  %831 = vmatprep.subr.bf16.mxu0 %v830_v30 }
  0x42   :  { %v155_v40 = vand.u32 4294901760, %v154_v34  ;;  %v806_v41 = vpack.c.bf16 %v173_v36, %v166_v35 }
  0x43   :  { %v810_v42 = vpack.c.bf16 %v187_v38, %v180_v37  ;;  %740 = vmatprep.mubr.f32.mxu1 %v145_v39  ;;  %774 = vmatmul.mubr.f32.vlgmr.msra.gmra.mrb[0].mxu0 %v153_v27 }
  0x44   :  { %741 = vmatmul.mubr.f32.vlgmr.msra.gmra.mrb[0].mxu1 %v155_v40  ;;  %807 = vmatprep.subr.bf16.mxu1 %v806_v41 }
  0x45   :  { %809 = vmatpush3.bf16.msra.mxu1 %v806_v41  ;;  %833 = vmatpush3.bf16.msra.mxu0 %v830_v30 }
  0x46   :  { %811 = vmatprep.subr.bf16.mxu1 %v810_v42  ;;  %835 = vmatprep.subr.bf16.mxu0 %v834_v43 }
  0x47   :  { %751 = vmatprep.mubr.f32.mxu1 %v1045_v13  ;;  %784 = vmatprep.mubr.f32.mxu0 %v1045_v13 }
  0x49   :  { %813 = vmatpush3.bf16.msra.mxu1 %v810_v42  ;;  %837 = vmatpush3.bf16.msra.mxu0 %v834_v43 }
  0x4a   :  { %815 = vmatprep.subr.bf16.mxu1 %v814_v44  ;;  %839 = vmatprep.subr.bf16.mxu0 %v798_v12 }
  0x4c   :  { %752 = vmatmul.mubr.f32.vlgmr.msra.gmra.mrb[0].mxu1 %v1047_v14  ;;  %785 = vmatmul.mubr.f32.vlgmr.msra.gmra.mrb[0].mxu0 %v1047_v14 }
  0x4d   :  { %817 = vmatpush3.bf16.msra.mxu1 %v814_v44  ;;  %841 = vmatpush3.bf16.msra.mxu0 %v798_v12 }
  0x4e   :  { %819 = vmatprep.subr.bf16.mxu1 %v818_v45  ;;  %843 = vmatprep.subr.bf16.mxu0 %v802_v16 }
  0x4f   :  { %762 = vmatprep.mubr.f32.mxu1 %v142_v20  ;;  %795 = vmatprep.mubr.f32.mxu0 %v1045_v13 }
  0x51   :  { %821 = vmatpush3.bf16.msra.mxu1 %v818_v45  ;;  %845 = vmatpush3.bf16.msra.mxu0 %v802_v16  ;;  %v694_v16 = vld [vmem:[%s1092_s3 + $0x1] ss:$0 sm:$0xff] }
  0x54   :  { %763 = vmatmul.mubr.f32.vlgmr.msra.gmra.mrb[0].mxu1 %v152_v21  ;;  %796 = vmatmul.mubr.f32.vlgmr.msra.gmra.mrb[0].mxu0 %v1047_v14 }
 0x127   :  { %v764_v46 = vpop.f32.mrb[0].mxu1  ;;  %v797_v47 = vpop.f32.mrb[0].mxu0 }
 0x128   :  { %v846_v48 = vadd.f32 %v797_v47, %v764_v46  ;;  %v334_v49 = vpop.f32.mrb[1].mxu1  ;;  %v590_v50 = vpop.f32.mrb[1].mxu0 }
 0x129   :  { %v847_v51 = vadd.f32 %v590_v50, %v334_v49 }
 0x12a   :  { %605 = vst.msk [vmem:[#allocation2 + $0x8] sm:$0xff] %vm65_vm0, %v846_v48 }
 0x12b   :  { %604 = vst.msk [vmem:[#allocation2] sm:$0xff] %vm65_vm0, %v847_v51 }
 0x131   :  { %v620_v53 = vld [vmem:[#allocation2 + $0x8] sm:$0xff] }
 0x132   :  { %v619_v54 = vld [vmem:[#allocation2] sm:$0xff]  ;;  %v627_v57 = vadd.f32 %v693_v52, %v620_v53 }
 0x133   :  { %v626_v56 = vadd.f32 %v693_v52, %v619_v54 }
 0x134   :  { %v631_v61 = vadd.f32 %v629_v58, %v627_v57 }
 0x135   :  { %v630_v59 = vadd.f32 %v628_v55, %v626_v56 }
 0x136   :  { %v635_v62 = vsel %vm65_vm0, %v631_v61, 0.0 }
 0x137   :  { %v632_v60 = vsel %vm65_vm0, %v630_v59, 0.0 }
 0x138   :  { %633 = vadd.xlane.f32.xlu0 %v632_v60 }
 0x13c   :  { %636 = vadd.xlane.f32.xlu0 %v635_v62 }
 0x1c5   :  { %v634_v63 = vpop.xlane.xlu0 %633 }
 0x1c6   :  { %v639_v0 = vmul.f32 0.03125, %v634_v63 }
 0x1c8   :  { %v641_v1 = vsub.f32 %v630_v59, %v639_v0 }
 0x1c9   :  { %v637_v2 = vpop.xlane.xlu0 %636 }
 0x1ca   :  { %v640_v3 = vmul.f32 0.03125, %v637_v2  ;;  %v643_v4 = vmul.f32 %v641_v1, %v641_v1 }
 0x1cc   :  { %v642_v5 = vsub.f32 %v631_v61, %v640_v3  ;;  %v645_v6 = vsel %vm65_vm0, %v643_v4, 0.0 }
 0x1cd   :  { %646 = vadd.xlane.f32.xlu1 %v645_v6 }
 0x1ce   :  { %v644_v7 = vmul.f32 %v642_v5, %v642_v5 }
 0x1d0   :  { %v648_v8 = vsel %vm65_vm0, %v644_v7, 0.0 }
 0x1d1   :  { %649 = vadd.xlane.f32.xlu1 %v648_v8 }
 0x25a   :  { %v647_v9 = vpop.xlane.xlu1 %646 }
 0x25b   :  { %v651_v10 = vmul.f32 0.03125, %v647_v9 }
 0x25d   :  { %v653_v11 = vadd.f32 1e-05, %v651_v10 }
 0x25e   :  { %v650_v12 = vpop.xlane.xlu1 %649 }
 0x25f   :  { %862 = vrsqrt.f32 %v653_v11  ;;  %v652_v13 = vmul.f32 0.03125, %v650_v12 }
 0x261   :  { %v654_v14 = vadd.f32 1e-05, %v652_v13 }
 0x263   :  { %864 = vrsqrt.f32 %v654_v14 }
 0x269   :  { %v863_v15 = vpop.eup %862 }
 0x26a   :  { %v657_v17 = vmul.f32 %v863_v15, %v641_v1 }
 0x26c   :  { %v664_v19 = vmul.f32 %v694_v16, %v657_v17 }
 0x26d   :  { %v865_v20 = vpop.eup %864 }
 0x26e   :  { %v658_v21 = vmul.f32 %v865_v20, %v642_v5  ;;  %v671_v22 = vadd.f32 %v695_v18, %v664_v19 }
 0x270   :  { %v665_v23 = vmul.f32 %v694_v16, %v658_v21  ;;  %673 = vst.msk [vmem:[#allocation9] sm:$0xff] %vm65_vm0, %v671_v22 }
 0x272   :  { %v672_v24 = vadd.f32 %v695_v18, %v665_v23 }
 0x274   :  { %674 = vst.msk [vmem:[#allocation9 + $0x8] sm:$0xff] %vm65_vm0, %v672_v24 }
 0x275   :  { %943 = shalt.err (!%p940_p0)
}
 0x276   :  { %s944_s10 = scalar_lea.hbm %s1093_s4, 256 }
 0x277   :  { %p945_p1 = scmp.ne.s32.totalorder %s1093_s4, %s944_s10  ;;  %p948_p2 = scmp.lt.u32.totalorder %s944_s10, %s1093_s4 }
 0x279   :  { %p950_p3 = pnand %p948_p2, %p945_p1 }
 0x27b   :  { %953 = shalt.err (!%p950_p3)
}
 0x27c   :  { %686 = dma.vmem_to_hbm [thread:$0]  %s681_s7, 256, %s1093_s4, [#allocation5], %s962_s27, %s962_s27, %s963_s28  }
 0x27d   :  { %958 = dma.done.wait [#allocation5], 256  }
 0x27e   :  { %959 = vsyncadd [#allocation5], 4294967040 }
 0x27f   :  { %690 = vsyncpa [#allocation4], 1 }
 0x280   :  { %691 = vsyncpa [#allocation7], 1 }
 0x281   :  { %692 = vsyncpa [#allocation5], 1 }

</bundles_post_ra>
